<compile_context>
chip_gen: v7x
topology: tpu7x:2x2x1
jax: 0.10.0
libtpu: 0.0.40
codegen_flags: <defaults>
</compile_context>

<pallas_src>
import jax
import jax.numpy as jnp
from jax.experimental import pallas as pl
from jax.experimental.pallas import tpu as pltpu


HIDDEN = 10    # fc1 out_features
N_OUT = 3      # fc2 out_features
N_PAD = 8      # minimally padded output width (sublane-friendly, lane-cheap)


def _round_up(x, m):
    return (x + m - 1) // m * m


def _cdiv(a, b):
    return (a + b - 1) // b


def _mlp_kernel(x_ref, w1_ref, b1_ref, w2_ref, b2_ref, o_ref):
    # fc1 + ReLU, fused: hidden activation stays in vregs/VMEM.
    h = jnp.dot(x_ref[...], w1_ref[...], preferred_element_type=jnp.float32)
    h = jnp.maximum(h + b1_ref[...], 0.0)
    # fc2 into the small (TB, N_PAD) output tile (cols >= 3 are zero).
    y = jnp.dot(h, w2_ref[...], preferred_element_type=jnp.float32)
    o_ref[...] = (y + b2_ref[...]).astype(o_ref.dtype)


def _choose_tiling(B, tb):
    """Pick batch tile TB and padded batch B_pad.

    Goals (perf review):
      * tile big enough to amortize ~0.35 us/step pipeline overhead,
      * >= 8 grid steps for large batches so v7x's two TCs both get work,
      * minimal batch padding (B_pad - B small) for mid-size batches.
    """
    B8 = _round_up(B, 8)
    # Steps implied by the requested tile, but at least 8 once the batch is
    # large enough that 8 tiles still amortize per-step overhead (>=1024 rows).
    steps = max(_cdiv(B8, tb), min(8, _cdiv(B8, 1024)), 1)
    TB = _round_up(_cdiv(B8, steps), 8)
    B_pad = _round_up(B8, TB)
    return TB, B_pad


def simple_nn_forward(x, w1, b1, w2, b2, *, tb=4096, use_bf16=False):
    """Forward pass of SimpleNN.

    x:  (B, input_size) float32
    w1: (input_size, 10) float32   b1: (1, 10) float32
    w2: (10, 3) float32            b2: (1, 3) float32
    Returns (B, 3) float32.

    tb:       target batch-tile size (rows per grid step).
    use_bf16: cast x / w1 to bfloat16 to halve the dominant HBM read at large
              batch (accumulation stays f32 via preferred_element_type).
    """
    B, D = x.shape
    assert w1.shape == (D, HIDDEN) and b1.shape == (1, HIDDEN)
    assert w2.shape == (HIDDEN, N_OUT) and b2.shape == (1, N_OUT)

    # --- batch tiling -------------------------------------------------------
    TB, B_pad = _choose_tiling(B, tb)
    if B_pad != B:
        x = jnp.pad(x, ((0, B_pad - B), (0, 0)))
    grid = (B_pad // TB,)

    # --- fc2 padded only to N_PAD=8 output columns (zeros beyond col 2) ------
    w2p = jnp.zeros((HIDDEN, N_PAD), jnp.float32).at[:, :N_OUT].set(w2)
    b2p = jnp.zeros((1, N_PAD), jnp.float32).at[:, :N_OUT].set(b2)

    # --- optional bf16 inputs for the bandwidth-dominant operand (x) ---------
    if use_bf16:
        x = x.astype(jnp.bfloat16)
        w1 = w1.astype(jnp.bfloat16)

    x_item = x.dtype.itemsize
    w1_item = w1.dtype.itemsize
    cost = pl.CostEstimate(
        flops=2 * B_pad * (D * HIDDEN + HIDDEN * N_PAD),
        transcendentals=0,
        bytes_accessed=(B_pad * D * x_item            # x read
                        + D * HIDDEN * w1_item        # w1
                        + HIDDEN * 4                  # b1
                        + HIDDEN * N_PAD * 4          # w2 (padded)
                        + N_PAD * 4                   # b2 (padded)
                        + B_pad * N_PAD * 4),         # output writeback
    )

    out_padded = pl.pallas_call(
        _mlp_kernel,
        out_shape=jax.ShapeDtypeStruct((B_pad, N_PAD), jnp.float32),
        grid=grid,
        in_specs=[
            pl.BlockSpec((TB, D), lambda i: (i, 0)),          # x: batch-tiled
            pl.BlockSpec((D, HIDDEN), lambda i: (0, 0)),      # w1: resident
            pl.BlockSpec((1, HIDDEN), lambda i: (0, 0)),      # b1: resident
            pl.BlockSpec((HIDDEN, N_PAD), lambda i: (0, 0)),  # w2p: resident
            pl.BlockSpec((1, N_PAD), lambda i: (0, 0)),       # b2p: resident
        ],
        out_specs=pl.BlockSpec((TB, N_PAD), lambda i: (i, 0)),
        compiler_params=pltpu.CompilerParams(
            dimension_semantics=("parallel",),  # v7x: shard batch over 2 TCs
        ),
        cost_estimate=cost,
    )(x, w1, b1, w2p, b2p)

    # Strip batch padding and the (zero) padded output columns.
    return out_padded[:B, :N_OUT]


def init_params(key, input_size):
    """Deterministic params mirroring nn.Linear shapes (stored as (in, out))."""
    k1, k2, k3, k4 = jax.random.split(key, 4)
    bound1 = 1.0 / (input_size ** 0.5)
    w1 = jax.random.uniform(k1, (input_size, HIDDEN), jnp.float32, -bound1, bound1)
    b1 = jax.random.uniform(k2, (1, HIDDEN), jnp.float32, -bound1, bound1)
    bound2 = 1.0 / (HIDDEN ** 0.5)
    w2 = jax.random.uniform(k3, (HIDDEN, N_OUT), jnp.float32, -bound2, bound2)
    b2 = jax.random.uniform(k4, (1, N_OUT), jnp.float32, -bound2, bound2)
    return w1, b1, w2, b2


def _ref_forward(x, w1, b1, w2, b2):
    return jnp.maximum(x @ w1 + b1, 0.0) @ w2 + b2


if __name__ == "__main__":
    key = jax.random.PRNGKey(0)
    input_size = 32

    k_x, k_x2, k_p = jax.random.split(key, 3)
    w1, b1, w2, b2 = init_params(k_p, input_size)

    # Small case (matches the module's toy usage): B=8, exact f32 path.
    batch = 8
    x = jax.random.normal(k_x, (batch, input_size), jnp.float32)
    out = jax.block_until_ready(simple_nn_forward(x, w1, b1, w2, b2))
    ref = _ref_forward(x, w1, b1, w2, b2)
    assert out.shape == (batch, N_OUT)
    assert jnp.allclose(out, ref, atol=1e-5, rtol=1e-5)

    # Non-multiple-of-8 batch to exercise tiling / padding (no longer pads to 1024).
    batch2 = 600
    x2 = jax.random.normal(k_x2, (batch2, input_size), jnp.float32)
    out2 = jax.block_until_ready(simple_nn_forward(x2, w1, b1, w2, b2))
    ref2 = _ref_forward(x2, w1, b1, w2, b2)
    assert out2.shape == (batch2, N_OUT)
    assert jnp.allclose(out2, ref2, atol=1e-5, rtol=1e-5)

    # bf16-input fast path (bandwidth optimization) with a looser tolerance.
    out_bf = jax.block_until_ready(
        simple_nn_forward(x, w1, b1, w2, b2, use_bf16=True))
    assert out_bf.shape == (batch, N_OUT)
    assert jnp.allclose(out_bf, ref, atol=2e-2, rtol=2e-2)

    print("KERNEL_OK")
</pallas_src>

<mosaic_0001>
module attributes {stable_mosaic.version = 11 : i64} {
  func.func @_mlp_kernel(%arg0: i32, %arg1: memref<8x32xf32, #tpu.memory_space<vmem>>, %arg2: memref<32x10xf32, #tpu.memory_space<vmem>>, %arg3: memref<1x10xf32, #tpu.memory_space<vmem>>, %arg4: memref<10x8xf32, #tpu.memory_space<vmem>>, %arg5: memref<1x8xf32, #tpu.memory_space<vmem>>, %arg6: memref<8x8xf32, #tpu.memory_space<vmem>>) attributes {dimension_semantics = [#tpu.dimension_semantics<parallel>], iteration_bounds = array<i64: 1>, scalar_prefetch = 0 : i64, scratch_operands = 0 : i64, tpu.core_type = #tpu.core_type<tc>, window_params = [{transform_indices = @transform_0, window_bounds = array<i64: 8, 32>}, {pipeline_mode = #tpu.pipeline_mode<synchronous>, transform_indices = @transform_1, window_bounds = array<i64: 32, 10>}, {pipeline_mode = #tpu.pipeline_mode<synchronous>, transform_indices = @transform_2, window_bounds = array<i64: 1, 10>}, {pipeline_mode = #tpu.pipeline_mode<synchronous>, transform_indices = @transform_3, window_bounds = array<i64: 10, 8>}, {pipeline_mode = #tpu.pipeline_mode<synchronous>, transform_indices = @transform_4, window_bounds = array<i64: 1, 8>}, {transform_indices = @transform_5, window_bounds = array<i64: 8, 8>}]} {
    %c0 = arith.constant 0 : index
    %c0_0 = arith.constant 0 : index
    %0 = vector.load %arg1[%c0, %c0_0] : memref<8x32xf32, #tpu.memory_space<vmem>>, vector<8x32xf32>
    %c0_1 = arith.constant 0 : index
    %c0_2 = arith.constant 0 : index
    %1 = vector.load %arg2[%c0_1, %c0_2] : memref<32x10xf32, #tpu.memory_space<vmem>>, vector<32x10xf32>
    %cst = arith.constant dense<0.000000e+00> : vector<8x10xf32>
    %2 = tpu.matmul %0, %1, %cst {dimension_numbers = #tpu.dot_dimension_numbers<[1], [0], [0], [1], [0, 0, 1, 1], [], []>} : vector<8x32xf32>, vector<32x10xf32>, vector<8x10xf32> -> vector<8x10xf32>
    %c0_3 = arith.constant 0 : index
    %c0_4 = arith.constant 0 : index
    %3 = vector.load %arg3[%c0_3, %c0_4] : memref<1x10xf32, #tpu.memory_space<vmem>>, vector<1x10xf32>
    %4 = vector.broadcast %3 : vector<1x10xf32> to vector<8x10xf32>
    %5 = arith.addf %2, %4 : vector<8x10xf32>
    %cst_5 = arith.constant 0.000000e+00 : f32
    %6 = vector.broadcast %cst_5 : f32 to vector<8x10xf32>
    %7 = arith.maximumf %5, %6 : vector<8x10xf32>
    %c0_6 = arith.constant 0 : index
    %c0_7 = arith.constant 0 : index
    %8 = vector.load %arg4[%c0_6, %c0_7] : memref<10x8xf32, #tpu.memory_space<vmem>>, vector<10x8xf32>
    %cst_8 = arith.constant dense<0.000000e+00> : vector<8x8xf32>
    %9 = tpu.matmul %7, %8, %cst_8 {dimension_numbers = #tpu.dot_dimension_numbers<[1], [0], [0], [1], [0, 0, 1, 1], [], []>} : vector<8x10xf32>, vector<10x8xf32>, vector<8x8xf32> -> vector<8x8xf32>
    %c0_9 = arith.constant 0 : index
    %c0_10 = arith.constant 0 : index
    %10 = vector.load %arg5[%c0_9, %c0_10] : memref<1x8xf32, #tpu.memory_space<vmem>>, vector<1x8xf32>
    %11 = vector.broadcast %10 : vector<1x8xf32> to vector<8x8xf32>
    %12 = arith.addf %9, %11 : vector<8x8xf32>
    %c0_11 = arith.constant 0 : index
    %c0_12 = arith.constant 0 : index
    %13 = vector.load %arg6[%c0_11, %c0_12] : memref<8x8xf32, #tpu.memory_space<vmem>>, vector<8x8xf32>
    tpu.vector_store %arg6[%c0_11, %c0_12], %12 {strides = array<i32>} : memref<8x8xf32, #tpu.memory_space<vmem>>, vector<8x8xf32>,
    return
  }
  func.func @transform_0(%arg0: i32) -> (i32, i32) {
    %c0_i32 = arith.constant 0 : i32
    %c0_i32_0 = arith.constant 0 : i32
    return %arg0, %c0_i32 : i32, i32
  }
  func.func @transform_1(%arg0: i32) -> (i32, i32) {
    %c0_i32 = arith.constant 0 : i32
    %c0_i32_0 = arith.constant 0 : i32
    %c0_i32_1 = arith.constant 0 : i32
    return %c0_i32, %c0_i32_0 : i32, i32
  }
  func.func @transform_2(%arg0: i32) -> (i32, i32) {
    %c0_i32 = arith.constant 0 : i32
    %c0_i32_0 = arith.constant 0 : i32
    %c0_i32_1 = arith.constant 0 : i32
    return %c0_i32, %c0_i32_0 : i32, i32
  }
  func.func @transform_3(%arg0: i32) -> (i32, i32) {
    %c0_i32 = arith.constant 0 : i32
    %c0_i32_0 = arith.constant 0 : i32
    %c0_i32_1 = arith.constant 0 : i32
    return %c0_i32, %c0_i32_0 : i32, i32
  }
  func.func @transform_4(%arg0: i32) -> (i32, i32) {
    %c0_i32 = arith.constant 0 : i32
    %c0_i32_0 = arith.constant 0 : i32
    %c0_i32_1 = arith.constant 0 : i32
    return %c0_i32, %c0_i32_0 : i32, i32
  }
  func.func @transform_5(%arg0: i32) -> (i32, i32) {
    %c0_i32 = arith.constant 0 : i32
    %c0_i32_0 = arith.constant 0 : i32
    return %arg0, %c0_i32 : i32, i32
  }
}

</mosaic_0001>

<bundles_post_ra>
// kernel: tpu_custom_call.1
= control target key start
LH: loop header
LB: loop body
LE: loop exit
PB: predicated region body
PF: predicated region fallthrough
CT: control target
= control target key end

     0   :  { %v281_v3 = vmov 0.0|0.0   ;;  %vm282_vm0 = vmmov 0   ;;  %v283_v6 = vmov 0.0   ;;  %s355_s0 = inlined_call_operand.vmem [shape: f32[8,32], index: 0, kind: input, shape index: {}]   ;;  %s356_s1 = inlined_call_operand.vmem [shape: f32[32,10], index: 1, kind: input, shape index: {}]   ;;  %s357_s2 = inlined_call_operand.vmem [shape: f32[1,10], index: 2, kind: input, shape index: {}]   ;;  %s358_s3 = inlined_call_operand.vmem [shape: f32[10,8], index: 3, kind: input, shape index: {}]   ;;  %s359_s4 = inlined_call_operand.vmem [shape: f32[1,8], index: 4, kind: input, shape index: {}]   ;;  %s360_s5 = inlined_call_operand.hbm [shape: f32[8,8], index: 5, kind: output, shape index: {}]  }
   0x1   :  { %v22_v0 = vld [vmem:[%s356_s1] sm:$0xff]  ;;  %v23_v1 = vld [vmem:[%s356_s1 + $0x8] sm:$0xff]  ;;  %v24_v2 = vld [vmem:[%s356_s1 + $0x10] sm:$0xff]  ;;  %242 = vmatprep.subr.bf16.mxu0 %v281_v3  ;;  %232 = vmatprep.mubr.msk.f32.mxu0 %vm282_vm0, %v283_v6 }
   0x2   :  { %v243_v4 = vpack.c.bf16 %v23_v1, %v22_v0  ;;  %v25_v5 = vld [vmem:[%s356_s1 + $0x18] sm:$0xff]  ;;  %248 = vmatprep.subr.bf16.mxu1 %v281_v3  ;;  %239 = vmatprep.mubr.msk.f32.mxu1 %vm282_vm0, %v283_v6 }
   0x3   :  { %10 = vsyncpa [#allocation3], 0  ;;  %v246_v7 = vpack.c.bf16 %v25_v5, %v24_v2  ;;  %v21_v8 = vld [vmem:[%s355_s0] sm:$0xff]  ;;  %vm33_vm1 = vcmask 261120   ;;  %v109_v10 = vld [vmem:[%s358_s3 + $0x8] sm:$0x3] }
   0x4   :  { %244 = vmatpush3.bf16.msra.mxu0 %v243_v4  ;;  %v108_v9 = vld [vmem:[%s358_s3] sm:$0xff]  ;;  %vm121_vm2 = vcmask 1041408   ;;  %vm284_vm3 = vmmov 1   ;;  %vm117_vm5 = vcmask 80896   ;;  %s285_s3 = smov [#allocation2]   ;;  %vm195_vm6 = vcmask 64512  }
   0x5   :  { %245 = vmatprep.subr.bf16.mxu0 %v281_v3  ;;  %v249_v11 = vpack.c.bf16 %v109_v10, %v108_v9  ;;  %vm250_vm4 = vmpackc.low %vm121_vm2, %vm284_vm3  ;;  %v211_v12 = vld [vmem:[%s357_s2] ss:$0 sm:$0xff]  ;;  %s203_s9 = sshll.u32 %s285_s3, 4  ;;  %s204_s9 = int_to_ptr.vmem [resolvable:$true] %s203_s9 }
   0x6   :  { %v213_v17 = vld [vmem:[%s359_s4] ss:$0 sm:$0xff]  ;;  %s257_s10 = scalar_lea.vmem %s204_s9, 128  ;;  %p262_p1 = scmp.lt.s32.totalorder %s204_s9, %s204_s9 }
   0x7   :  { %251 = vmatpush3.bf16.msk.msra.mxu1 %vm250_vm4, %v249_v11  ;;  %p258_p0 = scmp.ne.s32.totalorder %s204_s9, %s257_s10  ;;  %p263_p2 = scmp.lt.s32.totalorder %s257_s10, %s257_s10 }
   0x8   :  { %247 = vmatpush3.bf16.msra.mxu0 %v246_v7 }
   0x9   :  { %p264_p3 = por %p263_p2, %p262_p1 }
   0xb   :  { %233 = vmatmul.mubr.msk.f32.vlgmr.msra.gmra.mrb[0].mxu0 %vm33_vm1, %v21_v8  ;;  %p265_p4 = pnand %p264_p3, %p258_p0 }
  0xde   :  { %v103_v13 = vpop.f32.mrb[0].mxu0 }
  0xdf   :  { %v104_v14 = vadd.f32 %v211_v12, %v103_v13  ;;  %v234_v15 = vpop.f32.mrb[1].mxu0 }
  0xe1   :  { %v107_v16 = vmax.f32 %v104_v14, 0.0 }
  0xe3   :  { %240 = vmatmul.mubr.msk.f32.vlgmr.msra.gmra.mrb[0].mxu1 %vm117_vm5, %v107_v16 }
 0x1b6   :  { %v191_v18 = vpop.f32.mrb[0].mxu1 }
 0x1b7   :  { %v192_v19 = vadd.f32 %v213_v17, %v191_v18  ;;  %v241_v20 = vpop.f32.mrb[1].mxu1 }
 0x1b9   :  { %196 = vst.msk [vmem:[#allocation2] sm:$0xff] %vm195_vm6, %v192_v19 }
 0x1ba   :  { %268 = shalt.err (!%p265_p4)
}
 0x1bb   :  { %s269_s12 = scalar_lea.hbm %s360_s5, 128 }
 0x1bc   :  { %p270_p5 = scmp.ne.s32.totalorder %s360_s5, %s269_s12  ;;  %p273_p6 = scmp.lt.u32.totalorder %s269_s12, %s360_s5 }
 0x1be   :  { %p275_p7 = pnand %p273_p6, %p270_p5 }
 0x1c0   :  { %278 = shalt.err (!%p275_p7)
}
 0x1c1   :  { %206 = dma.vmem_to_hbm [thread:$0]  %s204_s9, 128, %s360_s5, [#allocation3]  }
 0x1c2   :  { %279 = dma.done.wait [#allocation3], 128  }
 0x1c3   :  { %280 = vsyncadd [#allocation3], 4294967168 }
 0x1c4   :  { %210 = vsyncpa [#allocation3], 1 }

</bundles_post_ra>
